<compile_context>
chip_gen: v6e
topology: v6e:2x2x1
jax: 0.10.0
libtpu: 0.0.40
codegen_flags: <defaults>
</compile_context>

<pallas_src>
import functools

import jax
import jax.numpy as jnp
from jax.experimental import pallas as pl
from jax.experimental.pallas import tpu as pltpu


def _round_up(x, m):
    return (x + m - 1) // m * m


# --------------------------------------------------------------------------- #
# get_features path: out = inp @ W^T + bias, tiled over (N, nlabels, nc).
# --------------------------------------------------------------------------- #
def _features_kernel(x_ref, w_ref, b_ref, out_ref):
    k = pl.program_id(2)

    @pl.when(k == 0)
    def _():
        # Bias initializes the resident output block (sublane broadcast).
        out_ref[...] = jnp.broadcast_to(b_ref[...], out_ref.shape)

    # Contract the LAST dim of both operands: (tm, tk) x (tn, tk) -> (tm, tn).
    out_ref[...] += jax.lax.dot_general(
        x_ref[...], w_ref[...],
        dimension_numbers=(((1,), (1,)), ((), ())),
        preferred_element_type=jnp.float32)


# --------------------------------------------------------------------------- #
# Reduced paths.  Batch lives on the lane axis (logits tile is (labels, batch))
# so the per-row scalars form lane-dense (1, tm) output slabs.  The bias rides
# in the matmul through an extra "ones" feature column; padded label rows get a
# -1e30 bias so they can never win the take_best max.
# --------------------------------------------------------------------------- #
def _take_best_kernel(x_ref, w_ref, out_ref, logits_acc, best_acc):
    j, k = pl.program_id(1), pl.program_id(2)
    nj, nk = pl.num_programs(1), pl.num_programs(2)

    @pl.when(k == 0)
    def _():
        logits_acc[...] = jnp.zeros_like(logits_acc)

    # (tn, tk) x (tm, tk) -> (tn, tm): labels on sublanes, batch on lanes.
    logits_acc[...] += jax.lax.dot_general(
        w_ref[...], x_ref[...],
        dimension_numbers=(((1,), (1,)), ((), ())),
        preferred_element_type=jnp.float32)

    @pl.when(k == nk - 1)
    def _():
        tile_best = jnp.max(logits_acc[...], axis=0, keepdims=True)  # (1, tm)

        @pl.when(j == 0)
        def _():
            best_acc[...] = tile_best

        @pl.when(j > 0)
        def _():
            best_acc[...] = jnp.maximum(best_acc[...], tile_best)

        @pl.when(j == nj - 1)
        def _():
            out_ref[...] = best_acc[...]


def _select_kernel(tn, x_ref, w_ref, y_ref, out_ref, logits_acc, sel_acc):
    # NOTE: assumes 0 <= y < nlabels (same implicit assumption as the PyTorch op).
    j, k = pl.program_id(1), pl.program_id(2)
    nj, nk = pl.num_programs(1), pl.num_programs(2)

    @pl.when(k == 0)
    def _():
        logits_acc[...] = jnp.zeros_like(logits_acc)

    logits_acc[...] += jax.lax.dot_general(
        w_ref[...], x_ref[...],
        dimension_numbers=(((1,), (1,)), ((), ())),
        preferred_element_type=jnp.float32)

    @pl.when(k == nk - 1)
    def _():
        label_ids = j * tn + jax.lax.broadcasted_iota(
            jnp.int32, logits_acc.shape, 0)                          # (tn, tm)
        mask = label_ids == y_ref[...]                               # vs (1, tm)
        tile_sel = jnp.sum(jnp.where(mask, logits_acc[...], 0.0),
                           axis=0, keepdims=True)                    # (1, tm)

        @pl.when(j == 0)
        def _():
            sel_acc[...] = tile_sel

        @pl.when(j > 0)
        def _():
            sel_acc[...] = sel_acc[...] + tile_sel

        @pl.when(j == nj - 1)
        def _():
            out_ref[...] = sel_acc[...]


# --------------------------------------------------------------------------- #
# Wrapper
# --------------------------------------------------------------------------- #
def linear_conditional_mask_logits(inp, weight, bias, y=None,
                                   take_best=False, get_features=False,
                                   *, feat_tm=512, feat_tn=1024, feat_tk=512,
                                   red_tm=512, red_tn=256, red_tk=512):
    """JAX/Pallas equivalent of LinearConditionalMaskLogits.forward.

    inp:    (N, nc)       float
    weight: (nlabels, nc) float   (nn.Linear layout, NOT transposed)
    bias:   (nlabels,)    float
    y:      (N,) int      (required when not take_best and not get_features)
    """
    n, nc = inp.shape
    nlabels = weight.shape[0]

    # Raise scoped VMEM explicitly (v5e default is 16 MiB; tiles below need
    # well under 16 MiB, but realistic shapes benefit from the headroom).
    vmem_limit = 32 * 1024 * 1024

    if get_features:
        tm = feat_tm if n >= feat_tm else _round_up(n, 8)
        n_pad = _round_up(n, tm)

        nc_pad = _round_up(nc, 128)
        tk = min(nc_pad, feat_tk)
        nc_pad = _round_up(nc_pad, tk)

        nl_pad = _round_up(nlabels, 128)
        tn = min(nl_pad, feat_tn)
        nl_pad = _round_up(nl_pad, tn)

        # bf16 MXU operands (x and W are each re-streamed across j / i tiles),
        # f32 bias + f32 accumulation in the output block.
        x_p = jnp.pad(inp.astype(jnp.bfloat16),
                      ((0, n_pad - n), (0, nc_pad - nc)))
        w_p = jnp.pad(weight.astype(jnp.bfloat16),
                      ((0, nl_pad - nlabels), (0, nc_pad - nc)))
        b_p = jnp.pad(bias.astype(jnp.float32),
                      (0, nl_pad - nlabels)).reshape(1, nl_pad)

        flops = 2 * n_pad * nc_pad * nl_pad
        bytes_acc = x_p.size * 2 + w_p.size * 2 + b_p.size * 4 + n_pad * nl_pad * 4

        out = pl.pallas_call(
            _features_kernel,
            out_shape=jax.ShapeDtypeStruct((n_pad, nl_pad), jnp.float32),
            grid_spec=pltpu.PrefetchScalarGridSpec(
                num_scalar_prefetch=0,
                grid=(n_pad // tm, nl_pad // tn, nc_pad // tk),
                in_specs=[
                    pl.BlockSpec((tm, tk), lambda i, j, k: (i, k)),   # x
                    pl.BlockSpec((tn, tk), lambda i, j, k: (j, k)),   # W (nlabels, nc)
                    pl.BlockSpec((1, tn), lambda i, j, k: (0, j)),    # bias row
                ],
                out_specs=pl.BlockSpec((tm, tn), lambda i, j, k: (i, j)),
            ),
            compiler_params=pltpu.CompilerParams(
                dimension_semantics=("parallel", "parallel", "arbitrary"),
                vmem_limit_bytes=vmem_limit),
            cost_estimate=pl.CostEstimate(flops=flops, transcendentals=0,
                                          bytes_accessed=bytes_acc),
        )(x_p, w_p, b_p)
        return out[:n, :nlabels]

    # ---------------------- per-row-scalar (reduced) paths ------------------ #
    tm = red_tm if n >= red_tm else _round_up(n, 8)
    n_pad = _round_up(n, tm)
    n_tiles = n_pad // tm

    nc_aug = nc + 1                            # extra "ones" column carries bias
    nc_pad = _round_up(nc_aug, 128)
    tk = min(nc_pad, red_tk)
    nc_pad = _round_up(nc_pad, tk)

    nl_pad = _round_up(nlabels, 128)
    tn = min(nl_pad, red_tn)
    nl_pad = _round_up(nl_pad, tn)

    x_p = jnp.zeros((n_pad, nc_pad), jnp.bfloat16)
    x_p = x_p.at[:n, :nc].set(inp.astype(jnp.bfloat16))
    x_p = x_p.at[:n, nc].set(1.0)              # bias feature

    w_p = jnp.zeros((nl_pad, nc_pad), jnp.bfloat16)
    w_p = w_p.at[:nlabels, :nc].set(weight.astype(jnp.bfloat16))
    w_p = w_p.at[:, nc].set(-1e30)             # pad labels: never win the max
    w_p = w_p.at[:nlabels, nc].set(bias.astype(jnp.bfloat16))

    grid = (n_tiles, nl_pad // tn, nc_pad // tk)
    in_specs = [
        pl.BlockSpec((tm, tk), lambda i, j, k: (i, k)),   # x tile
        pl.BlockSpec((tn, tk), lambda i, j, k: (j, k)),   # W tile
    ]
    out_spec = pl.BlockSpec((1, tm), lambda i, j, k: (i, 0))
    scratch = [pltpu.VMEM((tn, tm), jnp.float32),          # logits (labels, batch)
               pltpu.VMEM((1, tm), jnp.float32)]           # running max / sum
    cparams = pltpu.CompilerParams(
        dimension_semantics=("parallel", "arbitrary", "arbitrary"),
        vmem_limit_bytes=vmem_limit)
    flops = 2 * n_pad * nc_pad * nl_pad
    cost = pl.CostEstimate(flops=flops, transcendentals=0,
                           bytes_accessed=x_p.size * 2 + w_p.size * 2 + n_pad * 4)

    if take_best:
        out = pl.pallas_call(
            _take_best_kernel,
            out_shape=jax.ShapeDtypeStruct((n_tiles, tm), jnp.float32),
            grid_spec=pltpu.PrefetchScalarGridSpec(
                num_scalar_prefetch=0, grid=grid,
                in_specs=in_specs, out_specs=out_spec,
                scratch_shapes=scratch),
            compiler_params=cparams, cost_estimate=cost,
        )(x_p, w_p)
        return out.reshape(-1)[:n]

    # TODO(synk): for vocabulary-scale nlabels, replace the full logits matmul
    # with a scalar-prefetched gather of W[y] rows (pl.Element row gather +
    # per-row dot) to cut MXU work and weight bytes by a factor of nlabels.
    y_p = jnp.pad(y.reshape(-1).astype(jnp.int32),
                  (0, n_pad - n)).reshape(n_tiles, tm)
    out = pl.pallas_call(
        functools.partial(_select_kernel, tn),
        out_shape=jax.ShapeDtypeStruct((n_tiles, tm), jnp.float32),
        grid_spec=pltpu.PrefetchScalarGridSpec(
            num_scalar_prefetch=0, grid=grid,
            in_specs=in_specs
            + [pl.BlockSpec((1, tm), lambda i, j, k: (i, 0))],   # labels, lane-major
            out_specs=out_spec,
            scratch_shapes=scratch),
        compiler_params=cparams, cost_estimate=cost,
    )(x_p, w_p, y_p)
    return out.reshape(-1)[:n]


# ----------------------------- demo / test --------------------------------- #

if __name__ == "__main__":
    N, NC, NLABELS = 8, 32, 10

    key = jax.random.PRNGKey(0)
    k_x, k_w, k_b, k_y = jax.random.split(key, 4)

    # Deterministic synthetic parameters (shapes follow nn.Linear(nc, nlabels)).
    bound = 1.0 / (NC ** 0.5)
    weight = jax.random.uniform(k_w, (NLABELS, NC), jnp.float32, -bound, bound)
    bias = jax.random.uniform(k_b, (NLABELS,), jnp.float32, -bound, bound)

    inp = jax.random.normal(k_x, (N, NC), jnp.float32)
    y = jax.random.randint(k_y, (N,), 0, NLABELS, jnp.int32)

    # Default path: out[i] = fc(inp)[i, y[i]]
    out_sel = jax.block_until_ready(
        linear_conditional_mask_logits(inp, weight, bias, y=y))
    # take_best path
    out_best = jax.block_until_ready(
        linear_conditional_mask_logits(inp, weight, bias, take_best=True))
    # get_features path
    out_feat = jax.block_until_ready(
        linear_conditional_mask_logits(inp, weight, bias, get_features=True))

    # Plain-JAX f32 reference (kernel uses bf16 MXU inputs -> looser tolerance).
    logits_ref = inp @ weight.T + bias
    ref_sel = logits_ref[jnp.arange(N), y]
    ref_best = logits_ref.max(axis=1)

    assert out_feat.shape == (N, NLABELS)
    assert out_sel.shape == (N,)
    assert out_best.shape == (N,)
    assert jnp.allclose(out_feat, logits_ref, atol=5e-2, rtol=5e-2)
    assert jnp.allclose(out_sel, ref_sel, atol=5e-2, rtol=5e-2)
    assert jnp.allclose(out_best, ref_best, atol=5e-2, rtol=5e-2)

    print("KERNEL_OK")
</pallas_src>

<mosaic_0001>
module attributes {stable_mosaic.version = 11 : i64} {
  func.func @_select_kernel(%arg0: i32, %arg1: i32, %arg2: i32, %arg3: memref<8x128xbf16, #tpu.memory_space<vmem>>, %arg4: memref<128x128xbf16, #tpu.memory_space<vmem>>, %arg5: memref<1x8xi32, #tpu.memory_space<vmem>>, %arg6: memref<1x8xf32, #tpu.memory_space<vmem>>, %arg7: memref<128x8xf32, #tpu.memory_space<vmem>>, %arg8: memref<1x8xf32, #tpu.memory_space<vmem>>) attributes {dimension_semantics = [#tpu.dimension_semantics<parallel>, #tpu.dimension_semantics<arbitrary>, #tpu.dimension_semantics<arbitrary>], iteration_bounds = array<i64: 1, 1, 1>, scalar_prefetch = 0 : i64, scratch_operands = 2 : i64, tpu.core_type = #tpu.core_type<tc>, window_params = [{transform_indices = @transform_0, window_bounds = array<i64: 8, 128>}, {transform_indices = @transform_1, window_bounds = array<i64: 128, 128>}, {transform_indices = @transform_2, window_bounds = array<i64: 1, 8>}, {transform_indices = @transform_3, window_bounds = array<i64: 1, 8>}]} {
    %c0_i32 = arith.constant 0 : i32
    %0 = arith.cmpi eq, %arg2, %c0_i32 : i32
    %1 = arith.extui %0 : i1 to i32
    %c0_i32_0 = arith.constant 0 : i32
    %2 = arith.cmpi ne, %1, %c0_i32_0 : i32
    scf.if %2 {
      %cst_10 = arith.constant 0.000000e+00 : f32
      %12 = vector.broadcast %cst_10 : f32 to vector<128x8xf32>
      %c0_11 = arith.constant 0 : index
      %c0_12 = arith.constant 0 : index
      %13 = vector.load %arg7[%c0_11, %c0_12] : memref<128x8xf32, #tpu.memory_space<vmem>>, vector<128x8xf32>
      tpu.vector_store %arg7[%c0_11, %c0_12], %12 {strides = array<i32>} : memref<128x8xf32, #tpu.memory_space<vmem>>, vector<128x8xf32>,
    } else {
    }
    %c0 = arith.constant 0 : index
    %c0_1 = arith.constant 0 : index
    %3 = vector.load %arg7[%c0, %c0_1] : memref<128x8xf32, #tpu.memory_space<vmem>>, vector<128x8xf32>
    %c0_2 = arith.constant 0 : index
    %c0_3 = arith.constant 0 : index
    %4 = vector.load %arg4[%c0_2, %c0_3] : memref<128x128xbf16, #tpu.memory_space<vmem>>, vector<128x128xbf16>
    %c0_4 = arith.constant 0 : index
    %c0_5 = arith.constant 0 : index
    %5 = vector.load %arg3[%c0_4, %c0_5] : memref<8x128xbf16, #tpu.memory_space<vmem>>, vector<8x128xbf16>
    %cst = arith.constant dense<0.000000e+00> : vector<128x8xf32>
    %6 = tpu.matmul %4, %5, %cst {dimension_numbers = #tpu.dot_dimension_numbers<[1], [1], [0], [0], [0, 0, 1, 0], [], []>} : vector<128x128xbf16>, vector<8x128xbf16>, vector<128x8xf32> -> vector<128x8xf32>
    %7 = arith.addf %3, %6 : vector<128x8xf32>
    %c0_6 = arith.constant 0 : index
    %c0_7 = arith.constant 0 : index
    %8 = vector.load %arg7[%c0_6, %c0_7] : memref<128x8xf32, #tpu.memory_space<vmem>>, vector<128x8xf32>
    tpu.vector_store %arg7[%c0_6, %c0_7], %7 {strides = array<i32>} : memref<128x8xf32, #tpu.memory_space<vmem>>, vector<128x8xf32>,
    %c0_i32_8 = arith.constant 0 : i32
    %9 = arith.cmpi eq, %arg2, %c0_i32_8 : i32
    %10 = arith.extui %9 : i1 to i32
    %c0_i32_9 = arith.constant 0 : i32
    %11 = arith.cmpi ne, %10, %c0_i32_9 : i32
    scf.if %11 {
      %c128_i32 = arith.constant 128 : i32
      %12 = arith.muli %arg1, %c128_i32 : i32
      %13 = tpu.iota {dimensions = array<i32: 0>} : vector<128x8xi32>
      %14 = vector.broadcast %12 : i32 to vector<128x8xi32>
      %15 = arith.addi %14, %13 : vector<128x8xi32>
      %c0_10 = arith.constant 0 : index
      %c0_11 = arith.constant 0 : index
      %16 = vector.load %arg5[%c0_10, %c0_11] : memref<1x8xi32, #tpu.memory_space<vmem>>, vector<1x8xi32>
      %17 = vector.broadcast %16 : vector<1x8xi32> to vector<128x8xi32>
      %18 = arith.cmpi eq, %15, %17 : vector<128x8xi32>
      %c0_12 = arith.constant 0 : index
      %c0_13 = arith.constant 0 : index
      %19 = vector.load %arg7[%c0_12, %c0_13] : memref<128x8xf32, #tpu.memory_space<vmem>>, vector<128x8xf32>
      %cst_14 = arith.constant 0.000000e+00 : f32
      %20 = vector.broadcast %cst_14 : f32 to vector<128x8xf32>
      %21 = arith.select %18, %19, %20 : vector<128x8xi1>, vector<128x8xf32>
      %cst_15 = arith.constant dense<0.000000e+00> : vector<8xf32>
      %22 = vector.multi_reduction <add>, %21, %cst_15 [0] : vector<128x8xf32> to vector<8xf32>
      %23 = vector.shape_cast %22 : vector<8xf32> to vector<1x8xf32>
      %c0_i32_16 = arith.constant 0 : i32
      %24 = arith.cmpi eq, %arg1, %c0_i32_16 : i32
      %25 = arith.extui %24 : i1 to i32
      %c0_i32_17 = arith.constant 0 : i32
      %26 = arith.cmpi ne, %25, %c0_i32_17 : i32
      scf.if %26 {
        %c0_22 = arith.constant 0 : index
        %c0_23 = arith.constant 0 : index
        %33 = vector.load %arg8[%c0_22, %c0_23] : memref<1x8xf32, #tpu.memory_space<vmem>>, vector<1x8xf32>
        tpu.vector_store %arg8[%c0_22, %c0_23], %23 {strides = array<i32>} : memref<1x8xf32, #tpu.memory_space<vmem>>, vector<1x8xf32>,
      } else {
      }
      %c0_i32_18 = arith.constant 0 : i32
      %27 = arith.cmpi sgt, %arg1, %c0_i32_18 : i32
      %28 = arith.extui %27 : i1 to i32
      %c0_i32_19 = arith.constant 0 : i32
      %29 = arith.cmpi ne, %28, %c0_i32_19 : i32
      scf.if %29 {
        %c0_22 = arith.constant 0 : index
        %c0_23 = arith.constant 0 : index
        %33 = vector.load %arg8[%c0_22, %c0_23] : memref<1x8xf32, #tpu.memory_space<vmem>>, vector<1x8xf32>
        %34 = arith.addf %33, %23 : vector<1x8xf32>
        %c0_24 = arith.constant 0 : index
        %c0_25 = arith.constant 0 : index
        %35 = vector.load %arg8[%c0_24, %c0_25] : memref<1x8xf32, #tpu.memory_space<vmem>>, vector<1x8xf32>
        tpu.vector_store %arg8[%c0_24, %c0_25], %34 {strides = array<i32>} : memref<1x8xf32, #tpu.memory_space<vmem>>, vector<1x8xf32>,
      } else {
      }
      %c0_i32_20 = arith.constant 0 : i32
      %30 = arith.cmpi eq, %arg1, %c0_i32_20 : i32
      %31 = arith.extui %30 : i1 to i32
      %c0_i32_21 = arith.constant 0 : i32
      %32 = arith.cmpi ne, %31, %c0_i32_21 : i32
      scf.if %32 {
        %c0_22 = arith.constant 0 : index
        %c0_23 = arith.constant 0 : index
        %33 = vector.load %arg8[%c0_22, %c0_23] : memref<1x8xf32, #tpu.memory_space<vmem>>, vector<1x8xf32>
        %c0_24 = arith.constant 0 : index
        %c0_25 = arith.constant 0 : index
        %34 = vector.load %arg6[%c0_24, %c0_25] : memref<1x8xf32, #tpu.memory_space<vmem>>, vector<1x8xf32>
        tpu.vector_store %arg6[%c0_24, %c0_25], %33 {strides = array<i32>} : memref<1x8xf32, #tpu.memory_space<vmem>>, vector<1x8xf32>,
      } else {
      }
    } else {
    }
    return
  }
  func.func @transform_0(%arg0: i32, %arg1: i32, %arg2: i32) -> (i32, i32) {
    %c0_i32 = arith.constant 0 : i32
    return %arg0, %arg2 : i32, i32
  }
  func.func @transform_1(%arg0: i32, %arg1: i32, %arg2: i32) -> (i32, i32) {
    %c0_i32 = arith.constant 0 : i32
    return %arg1, %arg2 : i32, i32
  }
  func.func @transform_2(%arg0: i32, %arg1: i32, %arg2: i32) -> (i32, i32) {
    %c0_i32 = arith.constant 0 : i32
    %c0_i32_0 = arith.constant 0 : i32
    return %arg0, %c0_i32 : i32, i32
  }
  func.func @transform_3(%arg0: i32, %arg1: i32, %arg2: i32) -> (i32, i32) {
    %c0_i32 = arith.constant 0 : i32
    %c0_i32_0 = arith.constant 0 : i32
    return %arg0, %c0_i32 : i32, i32
  }
}

</mosaic_0001>

<bundles_post_ra>
// kernel: tpu_custom_call.1
= control target key start
LH: loop header
LB: loop body
LE: loop exit
PB: predicated region body
PF: predicated region fallthrough
CT: control target
= control target key end

     0   :  { %8 = vsyncpa [#allocation5], 0  ;;  %s681_s0 = inlined_call_operand.hbm [shape: bf16[8,128], index: 0, kind: input, shape index: {}]   ;;  %s682_s1 = inlined_call_operand.hbm [shape: bf16[128,128], index: 1, kind: input, shape index: {}]   ;;  %s683_s2 = inlined_call_operand.vmem [shape: s32[1,8], index: 2, kind: input, shape index: {}]   ;;  %s684_s3 = inlined_call_operand.hbm [shape: f32[1,8], index: 3, kind: output, shape index: {}]  }
   0x1   :  { %9 = vsyncpa [#allocation8], 0 }
   0x2   :  { %10 = vsyncpa [#allocation6], 0  ;;  %s556_s12 = smov [#allocation4]   ;;  %s557_s14 = smov [#allocation7]  }
   0x3   :  { %s17_s13 = sshll.u32 %s556_s12, 4  ;;  %s26_s15 = sshll.u32 %s557_s14, 4  ;;  %s18_s13 = int_to_ptr.vmem [resolvable:$true] %s17_s13  ;;  %s27_s15 = int_to_ptr.vmem [resolvable:$true] %s26_s15 }
   0x4   :  { %s498_s16 = scalar_lea.vmem %s18_s13, 64  ;;  %p503_p1 = scmp.lt.s32.totalorder %s18_s13, %s18_s13 }
   0x5   :  { %p499_p0 = scmp.ne.s32.totalorder %s18_s13, %s498_s16  ;;  %p504_p2 = scmp.lt.s32.totalorder %s498_s16, %s498_s16 }
   0x7   :  { %p505_p3 = por %p504_p2, %p503_p1 }
   0x9   :  { %p506_p4 = pnand %p505_p3, %p499_p0 }
   0xb   :  { %509 = shalt.err (!%p506_p4)
}
   0xc   :  { %20 = dma.hbm_to_vmem [thread:$0]  %s681_s0, 64, %s18_s13, [#allocation5]  }
   0xd   :  { %s518_s19 = scalar_lea.vmem %s27_s15, 1024  ;;  %p523_p6 = scmp.lt.s32.totalorder %s27_s15, %s27_s15 }
   0xe   :  { %p519_p5 = scmp.ne.s32.totalorder %s27_s15, %s518_s19  ;;  %p524_p7 = scmp.lt.s32.totalorder %s518_s19, %s518_s19 }
  0x10   :  { %p525_p8 = por %p524_p7, %p523_p6 }
  0x12   :  { %p526_p9 = pnand %p525_p8, %p519_p5 }
  0x14   :  { %529 = shalt.err (!%p526_p9)
}
  0x15   :  { %s558_s20 = smov 64   ;;  %s559_s21 = smov 4  }
  0x16   :  { %32 = dma.hbm_to_vmem [thread:$0]  %s682_s1, 1024, %s27_s15, [#allocation8], %s558_s20, %s558_s20, %s559_s21  }
  0x17   :  { %550 = dma.done.wait [#allocation5], 64  }
  0x18   :  { %551 = vsyncadd [#allocation5], 4294967232 }
  0x19   :  { %552 = dma.done.wait [#allocation8], 1024  }
  0x1a   :  { %553 = vsyncadd [#allocation8], 4294966272  ;;  %vm46_vm0 = vcmask 64512   ;;  %v560_v0 = vmov 0.0   ;;  %v95_v1 = vld [vmem:[#allocation4] sm:$0xf]  ;;  %v278_v18 = vlaneseq }
  0x1b   :  { %49 = vst.msk [vmem:[#allocation2 + $0x10] sm:$0xff] %vm46_vm0, %v560_v0  ;;  %47 = vst.msk [vmem:[#allocation2] sm:$0xff] %vm46_vm0, %v560_v0  ;;  %456 = vmatprep.subr.bf16.mxu0 %v95_v1  ;;  %v482_v2 = vld [vmem:[#allocation7] sm:$0xff]   ;;  %474 = vmatprep.subr.bf16.mxu1 %v95_v1  ;;  %v483_v3 = vld [vmem:[#allocation7 + $0x8] sm:$0xff]  }
  0x1c   :  { %48 = vst.msk [vmem:[#allocation2 + $0x8] sm:$0xff] %vm46_vm0, %v560_v0  ;;  %50 = vst.msk [vmem:[#allocation2 + $0x18] sm:$0xff] %vm46_vm0, %v560_v0  ;;  %457 = vmatpush3.bf16.xpose.msra.mxu0 %v95_v1  ;;  %475 = vmatpush3.bf16.xpose.msra.mxu1 %v95_v1  ;;  %v484_v4 = vld [vmem:[#allocation7 + $0x10] sm:$0xff]   ;;  %v486_v5 = vld [vmem:[#allocation7 + $0x20] sm:$0xff]   ;;  %v608_v31 = vshrl.u32 %v278_v18, 7 }
  0x1d   :  { %51 = vst.msk [vmem:[#allocation2 + $0x20] sm:$0xff] %vm46_vm0, %v560_v0  ;;  %52 = vst.msk [vmem:[#allocation2 + $0x28] sm:$0xff] %vm46_vm0, %v560_v0  ;;  %458 = vmatprep.mubr.bf16.mxu0 %v482_v2  ;;  %v487_v6 = vld [vmem:[#allocation7 + $0x28] sm:$0xff]   ;;  %466 = vmatprep.mubr.bf16.mxu1 %v486_v5  ;;  %v488_v7 = vld [vmem:[#allocation7 + $0x30] sm:$0xff]  }
  0x1e   :  { %53 = vst.msk [vmem:[#allocation2 + $0x30] sm:$0xff] %vm46_vm0, %v560_v0  ;;  %54 = vst.msk [vmem:[#allocation2 + $0x38] sm:$0xff] %vm46_vm0, %v560_v0  ;;  %v485_v8 = vld [vmem:[#allocation7 + $0x18] sm:$0xff]   ;;  %v281_v44 = vadd.s32 16, %v608_v31  ;;  %v280_v45 = vadd.s32 8, %v608_v31  ;;  %v282_v54 = vadd.s32 24, %v608_v31 }
  0x1f   :  { %55 = vst.msk [vmem:[#allocation2 + $0x40] sm:$0xff] %vm46_vm0, %v560_v0  ;;  %56 = vst.msk [vmem:[#allocation2 + $0x48] sm:$0xff] %vm46_vm0, %v560_v0  ;;  %v489_v9 = vld [vmem:[#allocation7 + $0x38] sm:$0xff]  }
  0x20   :  { %57 = vst.msk [vmem:[#allocation2 + $0x50] sm:$0xff] %vm46_vm0, %v560_v0  ;;  %58 = vst.msk [vmem:[#allocation2 + $0x58] sm:$0xff] %vm46_vm0, %v560_v0  ;;  %v619_v50 = vld [vmem:[%s683_s2] ss:$0 sm:$0xff]  ;;  %s561_s2 = smov [#allocation9]  }
  0x21   :  { %59 = vst.msk [vmem:[#allocation2 + $0x60] sm:$0xff] %vm46_vm0, %v560_v0  ;;  %60 = vst.msk [vmem:[#allocation2 + $0x68] sm:$0xff] %vm46_vm0, %v560_v0  ;;  %vm317_vm1 = vcmp.eq.s32.totalorder %v608_v31, %v619_v50  ;;  %vm319_vm2 = vcmp.eq.s32.totalorder %v281_v44, %v619_v50  ;;  %vm318_vm3 = vcmp.eq.s32.totalorder %v280_v45, %v619_v50  ;;  %s428_s24 = sshll.u32 %s561_s2, 4  ;;  %s429_s24 = int_to_ptr.vmem [resolvable:$true] %s428_s24 }
  0x22   :  { %61 = vst.msk [vmem:[#allocation2 + $0x70] sm:$0xff] %vm46_vm0, %v560_v0  ;;  %62 = vst.msk [vmem:[#allocation2 + $0x78] sm:$0xff] %vm46_vm0, %v560_v0  ;;  %v65_v10 = vld [vmem:[#allocation2 + $0x10] sm:$0xff]  ;;  %v63_v13 = vld [vmem:[#allocation2] sm:$0xff]  ;;  %v283_v0 = vadd.s32 32, %v608_v31  ;;  %vm320_vm4 = vcmp.eq.s32.totalorder %v282_v54, %v619_v50  ;;  %s530_s25 = scalar_lea.vmem %s429_s24, 16  ;;  %p535_p11 = scmp.lt.s32.totalorder %s429_s24, %s429_s24 }
  0x23   :  { %459 = vmatmul.mubr.bf16.vlgmr.msra.gmra.mxu0 %v483_v3  ;;  %467 = vmatmul.mubr.bf16.vlgmr.msra.gmra.mxu1 %v487_v6  ;;  %v66_v20 = vld [vmem:[#allocation2 + $0x18] sm:$0xff]  ;;  %v64_v26 = vld [vmem:[#allocation2 + $0x8] sm:$0xff]  ;;  %p531_p10 = scmp.ne.s32.totalorder %s429_s24, %s530_s25  ;;  %s534_s26 = scalar_lea.vmem %s429_s24, 32 }
  0x24   :  { %462 = vmatprep.mubr.bf16.mxu0 %v484_v4  ;;  %470 = vmatprep.mubr.bf16.mxu1 %v488_v7  ;;  %v67_v39 = vld [vmem:[#allocation2 + $0x20] sm:$0xff]  ;;  %v68_v56 = vld [vmem:[#allocation2 + $0x28] sm:$0xff]  ;;  %vm321_vm5 = vcmp.eq.s32.totalorder %v283_v0, %v619_v50  ;;  %p536_p12 = scmp.lt.s32.totalorder %s534_s26, %s530_s25 }
  0x25   :  { %v69_v33 = vld [vmem:[#allocation2 + $0x30] sm:$0xff]  ;;  %v70_v47 = vld [vmem:[#allocation2 + $0x38] sm:$0xff] }
  0x26   :  { %v71_v15 = vld [vmem:[#allocation2 + $0x40] sm:$0xff]  ;;  %v72_v28 = vld [vmem:[#allocation2 + $0x48] sm:$0xff]  ;;  %p537_p13 = por %p536_p12, %p535_p11 }
  0x27   :  { %v73_v11 = vld [vmem:[#allocation2 + $0x50] sm:$0xff]  ;;  %v74_v22 = vld [vmem:[#allocation2 + $0x58] sm:$0xff] }
  0x28   :  { %v75_v41 = vld [vmem:[#allocation2 + $0x60] sm:$0xff]  ;;  %v76_v58 = vld [vmem:[#allocation2 + $0x68] sm:$0xff]  ;;  %p538_p0 = pnand %p537_p13, %p531_p10 }
  0x29   :  { %v77_v35 = vld [vmem:[#allocation2 + $0x70] sm:$0xff]  ;;  %v78_v49 = vld [vmem:[#allocation2 + $0x78] sm:$0xff] }
  0x2b   :  { %463 = vmatmul.mubr.bf16.gmra.mxu0 %v485_v8  ;;  %471 = vmatmul.mubr.bf16.gmra.mxu1 %v489_v9  ;;  %v285_v8 = vadd.s32 48, %v608_v31 }
  0x2d   :  { %vm323_vm7 = vcmp.eq.s32.totalorder %v285_v8, %v619_v50 }
  0xe3   :  { %v460_v12 = vpop.f32.mrf.mxu0  ;;  %v468_v14 = vpop.f32.mrf.mxu1 }
  0xe4   :  { %v243_v16 = vadd.f32 %v460_v12, %v65_v10  ;;  %v251_v17 = vadd.f32 %v468_v14, %v73_v11  ;;  %v284_v11 = vadd.s32 40, %v608_v31 }
  0xe5   :  { %v178_v19 = vpop.f32.mrf.mxu0  ;;  %v210_v21 = vpop.f32.mrf.mxu1 }
  0xe6   :  { %260 = vst.msk [vmem:[#allocation2 + $0x10] sm:$0xff] %vm46_vm0, %v243_v16  ;;  %v241_v23 = vadd.f32 %v178_v19, %v63_v13  ;;  %268 = vst.msk [vmem:[#allocation2 + $0x50] sm:$0xff] %vm46_vm0, %v251_v17  ;;  %v249_v24 = vadd.f32 %v210_v21, %v71_v15  ;;  %v286_v16 = vadd.s32 56, %v608_v31  ;;  %v287_v19 = vadd.s32 64, %v608_v31 }
  0xe7   :  { %v461_v25 = vpop.f32.mrf.mxu0  ;;  %v469_v27 = vpop.f32.mrf.mxu1  ;;  %vm322_vm6 = vcmp.eq.s32.totalorder %v284_v11, %v619_v50 }
  0xe8   :  { %258 = vst.msk [vmem:[#allocation2] sm:$0xff] %vm46_vm0, %v241_v23  ;;  %v244_v29 = vadd.f32 %v461_v25, %v66_v20  ;;  %266 = vst.msk [vmem:[#allocation2 + $0x40] sm:$0xff] %vm46_vm0, %v249_v24  ;;  %v252_v30 = vadd.f32 %v469_v27, %v74_v22  ;;  %v288_v23 = vadd.s32 72, %v608_v31  ;;  %vm324_vm8 = vcmp.eq.s32.totalorder %v286_v16, %v619_v50 }
  0xe9   :  { %v181_v32 = vpop.f32.mrf.mxu0  ;;  %v213_v34 = vpop.f32.mrf.mxu1  ;;  %vm325_vm9 = vcmp.eq.s32.totalorder %v287_v19, %v619_v50 }
  0xea   :  { %261 = vst.msk [vmem:[#allocation2 + $0x18] sm:$0xff] %vm46_vm0, %v244_v29  ;;  %v242_v36 = vadd.f32 %v181_v32, %v64_v26  ;;  %269 = vst.msk [vmem:[#allocation2 + $0x58] sm:$0xff] %vm46_vm0, %v252_v30  ;;  %v250_v37 = vadd.f32 %v213_v34, %v72_v28  ;;  %v289_v30 = vadd.s32 80, %v608_v31  ;;  %vm326_vm10 = vcmp.eq.s32.totalorder %v288_v23, %v619_v50 }
  0xeb   :  { %v464_v38 = vpop.f32.mrf.mxu0  ;;  %v472_v40 = vpop.f32.mrf.mxu1 }
  0xec   :  { %259 = vst.msk [vmem:[#allocation2 + $0x8] sm:$0xff] %vm46_vm0, %v242_v36  ;;  %v247_v42 = vadd.f32 %v464_v38, %v69_v33  ;;  %267 = vst.msk [vmem:[#allocation2 + $0x48] sm:$0xff] %vm46_vm0, %v250_v37  ;;  %v255_v43 = vadd.f32 %v472_v40, %v77_v35  ;;  %v290_v36 = vadd.s32 88, %v608_v31  ;;  %vm327_vm11 = vcmp.eq.s32.totalorder %v289_v30, %v619_v50 }
  0xed   :  { %v194_v46 = vpop.f32.mrf.mxu0  ;;  %v226_v48 = vpop.f32.mrf.mxu1  ;;  %v335_v61 = vld [vmem:[#allocation2 + $0x10] sm:$0xff] }
  0xee   :  { %264 = vst.msk [vmem:[#allocation2 + $0x30] sm:$0xff] %vm46_vm0, %v247_v42  ;;  %v245_v51 = vadd.f32 %v194_v46, %v67_v39  ;;  %272 = vst.msk [vmem:[#allocation2 + $0x70] sm:$0xff] %vm46_vm0, %v255_v43  ;;  %v253_v52 = vadd.f32 %v226_v48, %v75_v41  ;;  %v351_v6 = vsel %vm319_vm2, %v335_v61, 0.0  ;;  %v291_v41 = vadd.s32 96, %v608_v31  ;;  %v343_v42 = vld [vmem:[#allocation2 + $0x50] sm:$0xff] }
  0xef   :  { %v333_v53 = vld [vmem:[#allocation2] sm:$0xff]  ;;  %v465_v55 = vpop.f32.mrf.mxu0  ;;  %v473_v57 = vpop.f32.mrf.mxu1  ;;  %v368_v14 = vsel %vm46_vm0, %v351_v6, 0.0  ;;  %v292_v46 = vadd.s32 104, %v608_v31  ;;  %vm328_vm12 = vcmp.eq.s32.totalorder %v290_v36, %v619_v50  ;;  %vm406_vm2 = vcmask 57344  }
  0xf0   :  { %262 = vst.msk [vmem:[#allocation2 + $0x20] sm:$0xff] %vm46_vm0, %v245_v51  ;;  %v248_v59 = vadd.f32 %v465_v55, %v70_v47  ;;  %270 = vst.msk [vmem:[#allocation2 + $0x60] sm:$0xff] %vm46_vm0, %v253_v52  ;;  %v256_v60 = vadd.f32 %v473_v57, %v78_v49  ;;  %v349_v1 = vsel %vm317_vm1, %v333_v53, 0.0  ;;  %v341_v32 = vld [vmem:[#allocation2 + $0x40] sm:$0xff]  ;;  %v359_v49 = vsel %vm327_vm11, %v343_v42, 0.0 }
  0xf1   :  { %v197_v62 = vpop.f32.mrf.mxu0  ;;  %v229_v63 = vpop.f32.mrf.mxu1  ;;  %v336_v4 = vld [vmem:[#allocation2 + $0x18] sm:$0xff]  ;;  %v365_v9 = vsel %vm46_vm0, %v349_v1, 0.0  ;;  %v357_v39 = vsel %vm325_vm9, %v341_v32, 0.0  ;;  %v293_v52 = vadd.s32 112, %v608_v31  ;;  %vm329_vm13 = vcmp.eq.s32.totalorder %v291_v41, %v619_v50 }
  0xf2   :  { %265 = vst.msk [vmem:[#allocation2 + $0x38] sm:$0xff] %vm46_vm0, %v248_v59  ;;  %v246_v2 = vadd.f32 %v197_v62, %v68_v56  ;;  %273 = vst.msk [vmem:[#allocation2 + $0x78] sm:$0xff] %vm46_vm0, %v256_v60  ;;  %v254_v3 = vadd.f32 %v229_v63, %v76_v58  ;;  %v352_v12 = vsel %vm320_vm4, %v336_v4, 0.0  ;;  %v344_v47 = vld [vmem:[#allocation2 + $0x58] sm:$0xff]  ;;  %v380_v48 = vsel %vm46_vm0, %v357_v39, 0.0 }
  0xf3   :  { %v334_v5 = vld [vmem:[#allocation2 + $0x8] sm:$0xff]  ;;  %v370_v21 = vsel %vm46_vm0, %v352_v12, 0.0  ;;  %v360_v55 = vsel %vm328_vm12, %v344_v47, 0.0  ;;  %v294_v57 = vadd.s32 120, %v608_v31  ;;  %vm330_vm14 = vcmp.eq.s32.totalorder %v292_v46, %v619_v50 }
  0xf4   :  { %v350_v7 = vsel %vm318_vm3, %v334_v5, 0.0  ;;  %263 = vst.msk [vmem:[#allocation2 + $0x28] sm:$0xff] %vm46_vm0, %v246_v2  ;;  %271 = vst.msk [vmem:[#allocation2 + $0x68] sm:$0xff] %vm46_vm0, %v254_v3  ;;  %v342_v37 = vld [vmem:[#allocation2 + $0x48] sm:$0xff]  ;;  %v384_v59 = vsel %vm46_vm0, %v359_v49, 0.0  ;;  %vm331_vm15 = vcmp.eq.s32.totalorder %v293_v52, %v619_v50  ;;  %v386_v63 = vsel %vm46_vm0, %v360_v55, 0.0 }
  0xf5   :  { %v366_v10 = vsel %vm46_vm0, %v350_v7, 0.0  ;;  %v339_v20 = vld [vmem:[#allocation2 + $0x30] sm:$0xff]  ;;  %v358_v44 = vsel %vm326_vm10, %v342_v37, 0.0  ;;  %vm332_vm1 = vcmp.eq.s32.totalorder %v294_v57, %v619_v50 }
  0xf6   :  { %v367_v13 = vadd.f32 %v366_v10, %v365_v9  ;;  %v355_v28 = vsel %vm323_vm7, %v339_v20, 0.0  ;;  %v382_v54 = vsel %vm46_vm0, %v358_v44, 0.0  ;;  %v347_v62 = vld [vmem:[#allocation2 + $0x70] sm:$0xff] }
  0xf7   :  { %v337_v15 = vld [vmem:[#allocation2 + $0x20] sm:$0xff]  ;;  %v376_v38 = vsel %vm46_vm0, %v355_v28, 0.0  ;;  %v363_v31 = vsel %vm331_vm15, %v347_v62, 0.0 }
  0xf8   :  { %v353_v17 = vsel %vm321_vm5, %v337_v15, 0.0  ;;  %v369_v18 = vadd.f32 %v368_v14, %v367_v13  ;;  %v345_v53 = vld [vmem:[#allocation2 + $0x60] sm:$0xff]  ;;  %v392_v8 = vsel %vm46_vm0, %v363_v31, 0.0 }
  0xf9   :  { %v340_v25 = vld [vmem:[#allocation2 + $0x38] sm:$0xff]  ;;  %v372_v26 = vsel %vm46_vm0, %v353_v17, 0.0  ;;  %v361_v60 = vsel %vm329_vm13, %v345_v53, 0.0 }
  0xfa   :  { %v371_v22 = vadd.f32 %v370_v21, %v369_v18  ;;  %v356_v34 = vsel %vm324_vm8, %v340_v25, 0.0  ;;  %v348_v2 = vld [vmem:[#allocation2 + $0x78] sm:$0xff]  ;;  %v388_v3 = vsel %vm46_vm0, %v361_v60, 0.0 }
  0xfb   :  { %v338_v24 = vld [vmem:[#allocation2 + $0x28] sm:$0xff]  ;;  %v378_v43 = vsel %vm46_vm0, %v356_v34, 0.0  ;;  %v364_v6 = vsel %vm332_vm1, %v348_v2, 0.0 }
  0xfc   :  { %v354_v27 = vsel %vm322_vm6, %v338_v24, 0.0  ;;  %v373_v29 = vadd.f32 %v372_v26, %v371_v22  ;;  %v346_v58 = vld [vmem:[#allocation2 + $0x68] sm:$0xff]  ;;  %v394_v10 = vsel %vm46_vm0, %v364_v6, 0.0 }
  0xfd   :  { %v374_v33 = vsel %vm46_vm0, %v354_v27, 0.0  ;;  %v362_v0 = vsel %vm330_vm14, %v346_v58, 0.0 }
  0xfe   :  { %v375_v35 = vadd.f32 %v374_v33, %v373_v29  ;;  %v390_v5 = vsel %vm46_vm0, %v362_v0, 0.0 }
 0x100   :  { %v377_v40 = vadd.f32 %v376_v38, %v375_v35 }
 0x102   :  { %v379_v45 = vadd.f32 %v378_v43, %v377_v40 }
 0x104   :  { %v381_v51 = vadd.f32 %v380_v48, %v379_v45 }
 0x106   :  { %v383_v56 = vadd.f32 %v382_v54, %v381_v51 }
 0x108   :  { %v385_v61 = vadd.f32 %v384_v59, %v383_v56 }
 0x10a   :  { %v387_v1 = vadd.f32 %v386_v63, %v385_v61 }
 0x10c   :  { %v389_v4 = vadd.f32 %v388_v3, %v387_v1 }
 0x10e   :  { %v391_v7 = vadd.f32 %v390_v5, %v389_v4 }
 0x110   :  { %v393_v9 = vadd.f32 %v392_v8, %v391_v7 }
 0x112   :  { %v395_v11 = vadd.f32 %v394_v10, %v393_v9 }
 0x114   :  { %v396_v12 = vrot.slane %v395_v11, 4 }
 0x116   :  { %v397_v13 = vadd.f32 %v396_v12, %v395_v11 }
 0x118   :  { %v398_v14 = vrot.slane %v397_v13, 2 }
 0x11a   :  { %v399_v15 = vadd.f32 %v398_v14, %v397_v13 }
 0x11c   :  { %v400_v50 = vrot.slane %v399_v15, 1 }
 0x11e   :  { %v401_v16 = vadd.f32 %v400_v50, %v399_v15 }
 0x120   :  { %407 = vst.msk [vmem:[#allocation3] sm:$0x1] %vm406_vm2, %v401_v16 }
 0x127   :  { %v419_v17 = vld [vmem:[#allocation3] sm:$0x1] }
 0x128   :  { %421 = vst.msk [vmem:[#allocation9] sm:$0x1] %vm406_vm2, %v419_v17 }
 0x129   :  { %541 = shalt.err (!%p538_p0)
}
 0x12a   :  { %431 = dma.vmem_to_hbm [thread:$0]  %s429_s24, 16, %s684_s3, [#allocation6]  }
 0x12b   :  { %554 = dma.done.wait [#allocation6], 16  }
 0x12c   :  { %555 = vsyncadd [#allocation6], 4294967280 }
 0x12d   :  { %435 = vsyncpa [#allocation5], 1 }
 0x12e   :  { %436 = vsyncpa [#allocation8], 1 }
 0x12f   :  { %437 = vsyncpa [#allocation6], 1 }

</bundles_post_ra>
